<compile_context>
chip_gen: v7x
topology: tpu7x:2x2x1
jax: 0.10.0
libtpu: 0.0.40
codegen_flags: <defaults>
</compile_context>

<pallas_src>
import math
import numpy as np
import jax
import jax.numpy as jnp
from jax.experimental import pallas as pl
from jax.experimental.pallas import tpu as pltpu


def _round_up(x, m):
    return (x + m - 1) // m * m


def _vmem_capacity_bytes():
    """Generation-aware VMEM size (64 MiB per core on v7x, 128 MiB on v5e/v6e)."""
    try:
        return int(pltpu.get_tpu_info().vmem_capacity_bytes)
    except Exception:
        return 64 * 1024 * 1024            # conservative fallback (v7x per-core)


def _choose_row_tile(n_rows, kin, outc_pad, itemsize, *, tile_n, vmem_budget_bytes):
    """Largest row tile fitting the VMEM budget, aligned for sublane packing,
    capped so the grid has >= 2 steps (both v7x TensorCores get work)."""
    row_align = 8 * max(1, 4 // int(itemsize))          # f32 -> 8, bf16 -> 16
    tile = max(row_align,
               min(_round_up(tile_n, row_align), _round_up(n_rows, row_align)))

    def step_bytes(t):
        return (2 * t * kin * itemsize                  # double-buffered input tile
                + 2 * t * outc_pad * itemsize           # double-buffered output tile
                + 2 * kin * outc_pad * itemsize         # resident (2x-charged) weights
                + 2 * 2 * outc_pad * 4)                 # BN shift (f32)

    while tile > row_align and step_bytes(tile) > vmem_budget_bytes:
        tile = max(row_align, _round_up(tile // 2, row_align))

    if n_rows >= 2 * row_align:                         # ensure >= 2 grid steps
        tile = min(tile, _round_up((n_rows + 1) // 2, row_align))
    return tile


def _deconv_bn_relu_kernel(xcol_ref, w_ref, shift_ref, o_ref):
    # One fused step: [tile, K*inc] @ [K*inc, outc_pad] on the MXU with f32
    # accumulation; folded-BN shift + ReLU on the VPU; lane-dense (x128) store.
    acc = jnp.dot(xcol_ref[...], w_ref[...], preferred_element_type=jnp.float32)
    acc = acc + shift_ref[...]                          # BN scale already in weights
    o_ref[...] = jnp.maximum(acc, 0.0).astype(o_ref.dtype)


def _fused_gemm_shift_relu(xcol, w_fold, shift, out_dtype, *, tile, vmem_limit_bytes):
    """out = relu(xcol @ w_fold + shift), row-tiled Pallas kernel (xcol rows
    must already be padded to a multiple of `tile`)."""
    n_pad, kin = xcol.shape
    outc_pad = w_fold.shape[1]
    itemsize = jnp.dtype(xcol.dtype).itemsize
    num_tiles = n_pad // tile

    cost = pl.CostEstimate(
        flops=2 * n_pad * kin * outc_pad,
        transcendentals=0,
        bytes_accessed=(n_pad * kin * itemsize
                        + kin * outc_pad * itemsize
                        + outc_pad * 4
                        + n_pad * outc_pad * jnp.dtype(out_dtype).itemsize),
    )

    return pl.pallas_call(
        _deconv_bn_relu_kernel,
        out_shape=jax.ShapeDtypeStruct((n_pad, outc_pad), out_dtype),
        grid_spec=pltpu.PrefetchScalarGridSpec(
            num_scalar_prefetch=0,
            grid=(num_tiles,),
            in_specs=[
                pl.BlockSpec((tile, kin), lambda i: (i, 0)),
                # constant index_maps -> weights / shift fetched once, not re-DMA'd
                pl.BlockSpec((kin, outc_pad), lambda i: (0, 0)),
                pl.BlockSpec((1, outc_pad), lambda i: (0, 0)),
            ],
            out_specs=pl.BlockSpec((tile, outc_pad), lambda i: (i, 0)),
        ),
        compiler_params=pltpu.CompilerParams(
            dimension_semantics=("parallel",),   # megacore / 2-TC sharding on v7x
            vmem_limit_bytes=int(vmem_limit_bytes),
        ),
        cost_estimate=cost,
    )(xcol, w_fold, shift)


def _build_transposed_kernel_map(coords, ks):
    """Output-centric neighbor table for a stride-1 transposed sparse conv.

    Returns nbr[N, K] int32 with nbr[i, k] = j such that coords[j] + offset[k]
    == coords[i], or N (points at an appended zero feature row) if absent.
    TODO(synk): torchsparse builds this with a GPU voxel hash; there is no Pallas
    equivalent for that data-dependent hashing, so it is done host-side.
    """
    assert ks % 2 == 1, "only odd kernel sizes supported here"
    coords = np.asarray(coords, dtype=np.int64)
    n = coords.shape[0]
    r = ks // 2
    offsets = np.array([(dx, dy, dz)
                        for dx in range(-r, r + 1)
                        for dy in range(-r, r + 1)
                        for dz in range(-r, r + 1)], dtype=np.int64)
    k = offsets.shape[0]
    table = {tuple(c): i for i, c in enumerate(coords.tolist())}
    nbr = np.full((n, k), n, dtype=np.int32)
    for i in range(n):
        ci = coords[i]
        for kk in range(k):
            nbr[i, kk] = table.get(tuple((ci - offsets[kk]).tolist()), n)
    return nbr


def basic_deconvolution_block_forward(feats, coords, weight,
                                      bn_gamma, bn_beta, bn_mean, bn_var,
                                      *, ks=3, stride=1, eps=1e-5,
                                      tile_n=4096,
                                      compute_dtype=jnp.bfloat16,
                                      out_dtype=None):
    """Forward of BasicDeconvolutionBlock on a sparse point set.

    feats:  [N, inc]        point features
    coords: [N, 3]          integer voxel coordinates (single batch)
    weight: [K, inc, outc]  transposed-conv weight, K = ks**3
    bn_*:   [outc]          BatchNorm affine params / running stats (eval mode)
    returns [N, outc] in `out_dtype` (default: compute_dtype, bf16)
    """
    # TODO(synk): stride > 1 transposed upsampling needs the target (encoder-stage)
    # coordinate map from torchsparse; only stride=1 is implemented.
    # TODO(synk): training-mode BN batch statistics are not implemented (eval mode).
    assert stride == 1, "only stride=1 transposed conv implemented"

    n, inc = feats.shape
    k, _, outc = weight.shape
    assert k == ks ** 3 and weight.shape[1] == inc
    out_dtype = compute_dtype if out_dtype is None else out_dtype

    kin = k * inc
    outc_pad = _round_up(outc, 128)            # lane-dense stores; no over-padding
    itemsize = jnp.dtype(compute_dtype).itemsize

    # Generation-aware VMEM limit, with a consistent auto-shrink budget below it.
    vmem_limit = min(_vmem_capacity_bytes() // 2, 96 * 1024 * 1024)
    vmem_budget = max(8 * 1024 * 1024, vmem_limit - 8 * 1024 * 1024)
    tile = _choose_row_tile(n, kin, outc_pad, itemsize,
                            tile_n=tile_n, vmem_budget_bytes=vmem_budget)
    n_pad = _round_up(n, tile)

    # --- kernel map (host), padded to the tile multiple so the gather directly
    # emits the padded im2col slab (kills the jnp.pad pass over [N, K*inc]) ------
    nbr = _build_transposed_kernel_map(coords, ks)                    # [N, K]
    if n_pad != n:
        nbr = np.concatenate(
            [nbr, np.full((n_pad - n, k), n, dtype=np.int32)], axis=0)
    nbr_flat = jnp.asarray(nbr.reshape(-1))                           # [n_pad*K]

    @jax.jit
    def _run(feats, weight, bn_gamma, bn_beta, bn_mean, bn_var, nbr_flat):
        # Fold eval-mode BN: scale goes into the weights (f32 fold, one bf16 cast),
        # shift stays as a per-channel f32 bias added after the MXU accumulate.
        scale = bn_gamma.astype(jnp.float32) * jax.lax.rsqrt(
            bn_var.astype(jnp.float32) + eps)
        shift = bn_beta.astype(jnp.float32) - bn_mean.astype(jnp.float32) * scale
        w_fold = weight.reshape(kin, outc).astype(jnp.float32) * scale[None, :]
        w_fold = w_fold.astype(compute_dtype)
        if outc_pad != outc:
            w_fold = jnp.pad(w_fold, ((0, 0), (0, outc_pad - outc)))
            shift = jnp.pad(shift, (0, outc_pad - outc))   # pad shift=0 -> ReLU(0)=0
        shift = shift.reshape(1, outc_pad)

        # im2col gather of bf16 rows (wrapper-side XLA gather; see TODO at top).
        feats_c = feats.astype(compute_dtype)
        feats_ext = jnp.concatenate(
            [feats_c, jnp.zeros((1, inc), compute_dtype)], axis=0)
        xcol = jnp.take(feats_ext, nbr_flat, axis=0).reshape(n_pad, kin)

        return _fused_gemm_shift_relu(xcol, w_fold, shift, out_dtype,
                                      tile=tile, vmem_limit_bytes=vmem_limit)

    out = _run(feats, weight, bn_gamma, bn_beta, bn_mean, bn_var, nbr_flat)
    return out[:n, :outc]


if __name__ == "__main__":
    ks, stride = 3, 1
    inc, outc = 16, 64
    grid_size = 16
    K = ks ** 3

    key = jax.random.PRNGKey(0)
    kc, kf, kw, kg, kb, km, kv = jax.random.split(key, 7)

    # Sparse voxel set: distinct occupied voxels in a 16^3 grid; keep 397 points
    # (not a multiple of the row tile -> exercises the padded-tail path).
    raw = jax.random.randint(kc, (800, 3), 0, grid_size, dtype=jnp.int32)
    coords = np.unique(np.asarray(raw), axis=0)[:397]
    n = coords.shape[0]

    feats = jax.random.normal(kf, (n, inc), jnp.float32)
    bound = 1.0 / math.sqrt(K * inc)
    weight = jax.random.uniform(kw, (K, inc, outc), jnp.float32, -bound, bound)
    bn_gamma = jax.random.uniform(kg, (outc,), jnp.float32, 0.5, 1.5)
    bn_beta = 0.1 * jax.random.normal(kb, (outc,), jnp.float32)
    bn_mean = 0.1 * jax.random.normal(km, (outc,), jnp.float32)
    bn_var = jax.random.uniform(kv, (outc,), jnp.float32, 0.5, 1.5)

    out = basic_deconvolution_block_forward(
        feats, coords, weight, bn_gamma, bn_beta, bn_mean, bn_var,
        ks=ks, stride=stride)
    out = jax.block_until_ready(out)
    assert out.shape == (n, outc)

    # ---- host reference (float64, per-offset gather-matmul, independent path) --
    # bf16-quantize exactly the streams the kernel sees (feats, folded weights) so
    # the comparison isolates plumbing errors from bf16 rounding.
    def q_bf16(x):
        return np.asarray(
            jnp.asarray(np.asarray(x, np.float32)).astype(jnp.bfloat16)
            .astype(jnp.float32), np.float64)

    nbr = _build_transposed_kernel_map(coords, ks)
    sc = np.asarray(bn_gamma, np.float64) / np.sqrt(np.asarray(bn_var, np.float64) + 1e-5)
    sh = np.asarray(bn_beta, np.float64) - np.asarray(bn_mean, np.float64) * sc
    w_fold_q = q_bf16(np.asarray(weight, np.float64) * sc[None, None, :])   # [K,inc,outc]
    f_q = q_bf16(feats)
    f_ext = np.concatenate([f_q, np.zeros((1, inc))], axis=0)
    ref = np.zeros((n, outc), np.float64)
    for kk in range(K):
        ref += f_ext[nbr[:, kk]] @ w_fold_q[kk]
    ref = np.maximum(ref + sh, 0.0)

    out64 = np.asarray(np.asarray(out.astype(jnp.float32)), np.float64)
    assert np.allclose(out64, ref, atol=2e-2, rtol=2e-2), "mismatch vs reference"
    print("KERNEL_OK")
</pallas_src>

<mosaic_0001>
module attributes {stable_mosaic.version = 11 : i64} {
  func.func @_deconv_bn_relu_kernel(%arg0: i32, %arg1: memref<208x432xbf16, #tpu.memory_space<vmem>>, %arg2: memref<432x128xbf16, #tpu.memory_space<vmem>>, %arg3: memref<1x128xf32, #tpu.memory_space<vmem>>, %arg4: memref<208x128xbf16, #tpu.memory_space<vmem>>) attributes {dimension_semantics = [#tpu.dimension_semantics<parallel>], iteration_bounds = array<i64: 2>, scalar_prefetch = 0 : i64, scratch_operands = 0 : i64, tpu.core_type = #tpu.core_type<tc>, window_params = [{transform_indices = @transform_0, window_bounds = array<i64: 208, 432>}, {pipeline_mode = #tpu.pipeline_mode<synchronous>, transform_indices = @transform_1, window_bounds = array<i64: 432, 128>}, {pipeline_mode = #tpu.pipeline_mode<synchronous>, transform_indices = @transform_2, window_bounds = array<i64: 1, 128>}, {transform_indices = @transform_3, window_bounds = array<i64: 208, 128>}]} {
    %c0 = arith.constant 0 : index
    %c0_0 = arith.constant 0 : index
    %0 = vector.load %arg1[%c0, %c0_0] : memref<208x432xbf16, #tpu.memory_space<vmem>>, vector<208x432xbf16>
    %c0_1 = arith.constant 0 : index
    %c0_2 = arith.constant 0 : index
    %1 = vector.load %arg2[%c0_1, %c0_2] : memref<432x128xbf16, #tpu.memory_space<vmem>>, vector<432x128xbf16>
    %cst = arith.constant dense<0.000000e+00> : vector<208x128xf32>
    %2 = tpu.matmul %0, %1, %cst {dimension_numbers = #tpu.dot_dimension_numbers<[1], [0], [0], [1], [0, 0, 1, 1], [], []>} : vector<208x432xbf16>, vector<432x128xbf16>, vector<208x128xf32> -> vector<208x128xf32>
    %c0_3 = arith.constant 0 : index
    %c0_4 = arith.constant 0 : index
    %3 = vector.load %arg3[%c0_3, %c0_4] : memref<1x128xf32, #tpu.memory_space<vmem>>, vector<1x128xf32>
    %4 = vector.broadcast %3 : vector<1x128xf32> to vector<208x128xf32>
    %5 = arith.addf %2, %4 : vector<208x128xf32>
    %cst_5 = arith.constant 0.000000e+00 : f32
    %6 = vector.broadcast %cst_5 : f32 to vector<208x128xf32>
    %7 = arith.maximumf %5, %6 : vector<208x128xf32>
    %8 = arith.truncf %7 : vector<208x128xf32> to vector<208x128xbf16>
    %c0_6 = arith.constant 0 : index
    %c0_7 = arith.constant 0 : index
    %9 = vector.load %arg4[%c0_6, %c0_7] : memref<208x128xbf16, #tpu.memory_space<vmem>>, vector<208x128xbf16>
    tpu.vector_store %arg4[%c0_6, %c0_7], %8 {strides = array<i32>} : memref<208x128xbf16, #tpu.memory_space<vmem>>, vector<208x128xbf16>,
    return
  }
  func.func @transform_0(%arg0: i32) -> (i32, i32) {
    %c0_i32 = arith.constant 0 : i32
    %c0_i32_0 = arith.constant 0 : i32
    return %arg0, %c0_i32 : i32, i32
  }
  func.func @transform_1(%arg0: i32) -> (i32, i32) {
    %c0_i32 = arith.constant 0 : i32
    %c0_i32_0 = arith.constant 0 : i32
    %c0_i32_1 = arith.constant 0 : i32
    return %c0_i32, %c0_i32_0 : i32, i32
  }
  func.func @transform_2(%arg0: i32) -> (i32, i32) {
    %c0_i32 = arith.constant 0 : i32
    %c0_i32_0 = arith.constant 0 : i32
    %c0_i32_1 = arith.constant 0 : i32
    return %c0_i32, %c0_i32_0 : i32, i32
  }
  func.func @transform_3(%arg0: i32) -> (i32, i32) {
    %c0_i32 = arith.constant 0 : i32
    %c0_i32_0 = arith.constant 0 : i32
    return %arg0, %c0_i32 : i32, i32
  }
}

</mosaic_0001>

<bundles_post_ra>
// kernel: _run.1
= control target key start
LH: loop header
LB: loop body
LE: loop exit
PB: predicated region body
PF: predicated region fallthrough
CT: control target
= control target key end

     0   :  { %8 = vsyncpa [#allocation3], 0  ;;  %s2119_s0 = inlined_call_operand.vmem [shape: bf16[416,432], index: 0, kind: input, shape index: {}]   ;;  %s2120_s1 = inlined_call_operand.vmem [shape: bf16[432,128], index: 1, kind: input, shape index: {}]   ;;  %s2121_s2 = inlined_call_operand.vmem [shape: f32[1,128], index: 2, kind: input, shape index: {}]   ;;  %s2122_s3 = inlined_call_operand.hbm [shape: bf16[416,128], index: 3, kind: output, shape index: {}]  }
   0x1   :  { %10 = vsyncpa [#allocation3 + $0x1], 0  ;;  %s1807_s12 = smov 0   ;;  %s1809_s13 = smov 0  }
   0x2   :  { %s1811_s14 = smov 0   ;;  %s1813_s15 = smov 0  }
   0x3 LB: > { %s1828_s16 = sadd.s32 4294967295, %s1781_s15   ;;  %s1244_s17 = sadd.s32 4294967294, %s1781_s15   ;;  %s1781_s15 = sphi %s1813_s15, %s2128_s15   ;;  %s1777_s14 = sphi %s1811_s14, %s2127_s14   ;;  %s1773_s13 = sphi %s1809_s13, %s2126_s13   ;;  %s1769_s12 = sphi %s1807_s12, %s2125_s12  }
   0x4   : > { %s1832_s18 = sadd.s32 1, %s1781_s15   ;;  %s91_s19 = sadd.s32 1, %s1777_s14 }
   0x5   : > { %s88_s20 = ssub.s32 %s1781_s15, %s1832_s18  ;;  %p101_p0 = scmp.ne.s32.totalorder %s1777_s14, %s1773_s13 }
   0x6   : > { %p89_p1 = scmp.eq.s32.totalorder %s88_s20, 0  ;;  %p102_p2 = scmp.eq.s32.totalorder %s1828_s16, 1 }
   0x7   : > { %p107_p3 = scmp.ne.s32.totalorder %s1773_s13, %s1769_s12  ;;  %p108_p4 = scmp.eq.s32.totalorder %s1244_s17, 1 }
   0x8   : > { %s1843_s21 = scalar_select %p89_p1, %s1777_s14, %s91_s19  }
   0x9   : > { %p1845_p5 = por %p102_p2, %p101_p0  ;;  %p1849_p6 = por %p108_p4, %p107_p3 }
   0xa   : > { %p1247_p7 = scmp.ge.s32.totalorder %s1781_s15, 1  ;;  %p142_p8 = scmp.lt.s32.totalorder %s1781_s15, 3 }
   0xc   : > { %p143_p9 = pnand %p1247_p7, %p142_p8 }
   0xd   : > { %v1614_v0 = vld [vmem:[%s2120_s1 + $0x80] sm:$0xff] (!%p143_p9)   ;;  %v1783_v1 = vmov (!%p143_p9), 0   ;;  %v1617_v4 = vld [vmem:[%s2120_s1 + $0x88] sm:$0xff] (!%p143_p9)   ;;  %v1620_v7 = vld [vmem:[%s2120_s1 + $0x90] sm:$0xff] (!%p143_p9)   ;;  %s167_s24 = smul.u32 (!%p143_p9), 26, %s1828_s16  ;;  %vm698_vm0 = vcmask (!%p143_p9), 392192  }
   0xe   : > { %146 = sbr.rel (%p143_p9) target bundleno = 389 (0x185), region = 32  ;;  %875 = vmatprep.subr.bf16.mxu1 (!%p143_p9), %v1783_v1  ;;  %v1615_v2 = vld [vmem:[%s2120_s1 + $0x40] sm:$0xff] (!%p143_p9)   ;;  %v1618_v5 = vld [vmem:[%s2120_s1 + $0x48] sm:$0xff] (!%p143_p9)   ;;  %v1621_v8 = vld [vmem:[%s2120_s1 + $0x50] sm:$0xff] (!%p143_p9)   ;;  %s164_s5 = sand.u32 (!%p143_p9), 1, %s1773_s13  }
   0xf   : > { %876 = vmatpush1.bf16.msra.mxu1 (!%p143_p9), %v1614_v0  ;;  %v1616_v3 = vld [vmem:[%s2120_s1] sm:$0xff] (!%p143_p9)   ;;  %1477 = vmatprep.subr.bf16.mxu0 (!%p143_p9), %v1615_v2  ;;  %v1619_v6 = vld [vmem:[%s2120_s1 + $0x8] sm:$0xff] (!%p143_p9)   ;;  %v1622_v9 = vld [vmem:[%s2120_s1 + $0x10] sm:$0xff] (!%p143_p9)   ;;  %p168_p10 = scmp.lt.s32.totalorder (!%p143_p9), %s167_s24, 51  ;;  %s1571_s6 = smul.u32 (!%p143_p9), 104, %s164_s5 }
  0x10   : > { %877 = vmatprep.subr.bf16.mxu1 (!%p143_p9), %v1783_v1  ;;  %1478 = vmatpush3.bf16.msra.mxu0 (!%p143_p9), %v1616_v3  ;;  %v1623_v10 = vld [vmem:[%s2120_s1 + $0x98] sm:$0xff] (!%p143_p9)   ;;  %v1627_v13 = vld [vmem:[%s2120_s1 + $0x60] sm:$0xff] (!%p143_p9)   ;;  %v1630_v16 = vld [vmem:[%s2120_s1 + $0x68] sm:$0xff] (!%p143_p9)   ;;  %s2078_s17 = scalar_lea.sflag (!%p143_p9), [#allocation3], %s164_s5  ;;  %s1784_s19 = smov (!%p143_p9), [#allocation2]  }
  0x11   : > { %1479 = vmatprep.subr.bf16.mxu0 (!%p143_p9), %v1618_v5  ;;  %v1624_v11 = vld [vmem:[%s2120_s1 + $0x58] sm:$0xff] (!%p143_p9)   ;;  %v1626_v14 = vld [vmem:[%s2120_s1 + $0xa0] sm:$0xff] (!%p143_p9)   ;;  %v1629_v17 = vld [vmem:[%s2120_s1 + $0xa8] sm:$0xff] (!%p143_p9)   ;;  %s2029_s7 = scalar_lea.vmem (!%p143_p9), [#allocation2], %s1571_s6  ;;  %s1723_s20 = sshll.u32 (!%p143_p9), %s1784_s19, 4  ;;  %s1724_s20 = int_to_ptr.vmem [resolvable:$false] %s1723_s20 }
  0x12   : > { %v1625_v12 = vld [vmem:[%s2120_s1 + $0x18] sm:$0xff] (!%p143_p9)   ;;  %v1628_v15 = vld [vmem:[%s2120_s1 + $0x20] sm:$0xff] (!%p143_p9)   ;;  %v1631_v18 = vld [vmem:[%s2120_s1 + $0x28] sm:$0xff] (!%p143_p9)   ;;  %s1182_s8 = sshll.u32 (!%p143_p9), %s2029_s7, 4  ;;  %s1725_s25 = scalar_lea.vmem (!%p143_p9), %s1724_s20, 3328  ;;  %s2073_s8 = int_to_ptr.vmem [resolvable:$true] %s1182_s8 }
  0x13   : > { %878 = vmatpush1.bf16.msra.mxu1 (!%p143_p9), %v1617_v4  ;;  %v1633_v19 = vld [vmem:[%s2120_s1 + $0x70] sm:$0xff] (!%p143_p9)   ;;  %v1635_v22 = vld [vmem:[%s2120_s1 + $0xb8] sm:$0xff] (!%p143_p9)   ;;  %v1638_v26 = vld [vmem:[%s2120_s1 + $0xc0] sm:$0xff] (!%p143_p9)   ;;  %p1726_p0 = scmp.lt.s32.totalorder (!%p143_p9), %s2073_s8, %s1724_s20 }
  0x14   : > { %879 = vmatprep.subr.bf16.mxu1 (!%p143_p9), %v1783_v1  ;;  %1480 = vmatpush3.bf16.msra.mxu0 (!%p143_p9), %v1619_v6  ;;  %v1632_v20 = vld [vmem:[%s2120_s1 + $0xb0] sm:$0xff] (!%p143_p9)   ;;  %v1636_v23 = vld [vmem:[%s2120_s1 + $0x78] sm:$0xff] (!%p143_p9)   ;;  %v1642_v30 = vld [vmem:[%s2120_s1 + $0xc8] sm:$0xff] (!%p143_p9)  }
  0x15   : > { %1481 = vmatprep.subr.bf16.mxu0 %v1621_v8  ;;  %s2130_s24 = smov (!%p168_p10, %s167_s24), 51  ;;  %v1634_v21 = vld [vmem:[%s2120_s1 + $0x30] sm:$0xff]   ;;  %v1637_v25 = vld [vmem:[%s2120_s1 + $0x38] sm:$0xff]  }
  0x16   : > { %s1372_s26 = sshll.u32 %s2130_s24, 4  ;;  %v1643_v31 = vld [vmem:[%s2120_s1 + $0xd0] sm:$0xff]  }
  0x17   : > { %880 = vmatpush1.bf16.msra.mxu1 %v1620_v7  ;;  %s1929_s24 = scalar_lea.vmem %s2119_s0, %s1372_s26 }
  0x18   : > { %881 = vmatprep.subr.bf16.mxu1 %v1783_v1  ;;  %1482 = vmatpush3.bf16.msra.mxu0 %v1622_v9  ;;  %v1641_v24 = vld [vmem:[%s1929_s24 + $0x4] ss:$16 sps:$4 sm:$0xff]   ;;  %v1648_v27 = vld [vmem:[%s1929_s24 + $0xc] ss:$16 sps:$4 sm:$0xff]   ;;  %v1639_v28 = vld [vmem:[%s1929_s24] ss:$16 sps:$4 sm:$0xff]  }
  0x19   : > { %1483 = vmatprep.subr.bf16.mxu0 %v1624_v11  ;;  %770 = vmatprep.mubr.bf16.mxu0 %v1641_v24  ;;  %v1644_v29 = vld [vmem:[%s1929_s24 + $0x24] ss:$16 sps:$4 sm:$0xff]   ;;  %v1649_v32 = vld [vmem:[%s1929_s24 + $0x20] ss:$16 sps:$4 sm:$0xff]   ;;  %v1646_v34 = vld [vmem:[%s1929_s24 + $0x8] ss:$16 sps:$4 sm:$0xff]  }
  0x1a   : > { %1330 = vmatprep.mubr.msk.bf16.mxu1 %vm698_vm0, %v1648_v27  ;;  %v1650_v33 = vld [vmem:[%s1929_s24 + $0x44] ss:$16 sps:$4 sm:$0xff]   ;;  %v1652_v35 = vld [vmem:[%s1929_s24 + $0x2c] ss:$16 sps:$4 sm:$0xff]   ;;  %v1654_v36 = vld [vmem:[%s1929_s24 + $0x40] ss:$16 sps:$4 sm:$0xff]  }
  0x1b   : > { %882 = vmatpush1.bf16.msra.mxu1 %v1623_v10  ;;  %v1656_v37 = vld [vmem:[%s1929_s24 + $0x64] ss:$16 sps:$4 sm:$0xff]   ;;  %v1655_v38 = vld [vmem:[%s1929_s24 + $0x28] ss:$16 sps:$4 sm:$0xff]   ;;  %v1658_v39 = vld [vmem:[%s1929_s24 + $0x4c] ss:$16 sps:$4 sm:$0xff]  }
  0x1c   : > { %883 = vmatprep.subr.bf16.mxu1 %v1783_v1  ;;  %1484 = vmatpush3.bf16.msra.mxu0 %v1625_v12  ;;  %v1660_v40 = vld [vmem:[%s1929_s24 + $0x60] ss:$16 sps:$4 sm:$0xff]   ;;  %v1662_v41 = vld [vmem:[%s1929_s24 + $0x84] ss:$16 sps:$4 sm:$0xff]   ;;  %v1661_v42 = vld [vmem:[%s1929_s24 + $0x48] ss:$16 sps:$4 sm:$0xff]  }
  0x1d   : > { %1485 = vmatprep.subr.bf16.mxu0 %v1627_v13  ;;  %v1664_v43 = vld [vmem:[%s1929_s24 + $0x6c] ss:$16 sps:$4 sm:$0xff]   ;;  %v1666_v44 = vld [vmem:[%s1929_s24 + $0x80] ss:$16 sps:$4 sm:$0xff]   ;;  %v1668_v45 = vld [vmem:[%s1929_s24 + $0xa4] ss:$16 sps:$4 sm:$0xff]  }
  0x1e   : > { %v1667_v46 = vld [vmem:[%s1929_s24 + $0x68] ss:$16 sps:$4 sm:$0xff]   ;;  %v1670_v47 = vld [vmem:[%s1929_s24 + $0x8c] ss:$16 sps:$4 sm:$0xff]   ;;  %v1672_v48 = vld [vmem:[%s1929_s24 + $0xa0] ss:$16 sps:$4 sm:$0xff]  }
  0x1f   : > { %884 = vmatpush1.bf16.msra.mxu1 %v1626_v14  ;;  %v1674_v49 = vld [vmem:[%s1929_s24 + $0xc4] ss:$16 sps:$4 sm:$0xff]   ;;  %v1673_v50 = vld [vmem:[%s1929_s24 + $0x88] ss:$16 sps:$4 sm:$0xff]   ;;  %v1676_v51 = vld [vmem:[%s1929_s24 + $0xac] ss:$16 sps:$4 sm:$0xff]  }
  0x20   : > { %885 = vmatprep.subr.bf16.mxu1 %v1783_v1  ;;  %1486 = vmatpush3.bf16.msra.mxu0 %v1628_v15  ;;  %v1678_v52 = vld [vmem:[%s1929_s24 + $0xc0] ss:$16 sps:$4 sm:$0xff]   ;;  %v1680_v53 = vld [vmem:[%s1929_s24 + $0xe4] ss:$16 sps:$4 sm:$0xff]   ;;  %v1679_v54 = vld [vmem:[%s1929_s24 + $0xa8] ss:$16 sps:$4 sm:$0xff]  }
  0x21   : > { %1487 = vmatprep.subr.bf16.mxu0 %v1630_v16  ;;  %v1682_v55 = vld [vmem:[%s1929_s24 + $0xcc] ss:$16 sps:$4 sm:$0xff]   ;;  %v1684_v56 = vld [vmem:[%s1929_s24 + $0xe0] ss:$16 sps:$4 sm:$0xff]   ;;  %v1686_v57 = vld [vmem:[%s1929_s24 + $0x104] ss:$16 sps:$4 sm:$0xff]  }
  0x22   : > { %v1685_v58 = vld [vmem:[%s1929_s24 + $0xc8] ss:$16 sps:$4 sm:$0xff]   ;;  %v1688_v59 = vld [vmem:[%s1929_s24 + $0xec] ss:$16 sps:$4 sm:$0xff]   ;;  %v1690_v60 = vld [vmem:[%s1929_s24 + $0x100] ss:$16 sps:$4 sm:$0xff]  }
  0x23   : > { %886 = vmatpush1.bf16.msra.mxu1 %v1629_v17  ;;  %v1692_v61 = vld [vmem:[%s1929_s24 + $0x124] ss:$16 sps:$4 sm:$0xff]   ;;  %v1691_v62 = vld [vmem:[%s1929_s24 + $0xe8] ss:$16 sps:$4 sm:$0xff]   ;;  %v1694_v63 = vld [vmem:[%s1929_s24 + $0x10c] ss:$16 sps:$4 sm:$0xff]  }
  0x24   : > { %887 = vmatprep.subr.bf16.mxu1 %v1783_v1  ;;  %1488 = vmatpush3.bf16.msra.mxu0 %v1631_v18  ;;  %v1696_v0 = vld [vmem:[%s1929_s24 + $0x120] ss:$16 sps:$4 sm:$0xff]   ;;  %v1697_v2 = vld [vmem:[%s1929_s24 + $0x108] ss:$16 sps:$4 sm:$0xff]   ;;  %v1700_v3 = vld [vmem:[%s1929_s24 + $0x12c] ss:$16 sps:$4 sm:$0xff]  }
  0x25   : > { %1489 = vmatprep.subr.bf16.mxu0 %v1633_v19  ;;  %v1702_v4 = vld [vmem:[%s1929_s24 + $0x140] ss:$16 sps:$4 sm:$0xff]   ;;  %v1704_v5 = vld [vmem:[%s1929_s24 + $0x164] ss:$16 sps:$4 sm:$0xff]   ;;  %v1703_v6 = vld [vmem:[%s1929_s24 + $0x128] ss:$16 sps:$4 sm:$0xff]  }
  0x26   : > { %v1706_v7 = vld [vmem:[%s1929_s24 + $0x14c] ss:$16 sps:$4 sm:$0xff]   ;;  %v1708_v8 = vld [vmem:[%s1929_s24 + $0x160] ss:$16 sps:$4 sm:$0xff]   ;;  %v1710_v9 = vld [vmem:[%s1929_s24 + $0x184] ss:$16 sps:$4 sm:$0xff]  }
  0x27   : > { %888 = vmatpush1.bf16.msra.mxu1 %v1632_v20  ;;  %v1709_v10 = vld [vmem:[%s1929_s24 + $0x148] ss:$16 sps:$4 sm:$0xff]   ;;  %v1712_v11 = vld [vmem:[%s1929_s24 + $0x16c] ss:$16 sps:$4 sm:$0xff]   ;;  %v1714_v12 = vld [vmem:[%s1929_s24 + $0x180] ss:$16 sps:$4 sm:$0xff]  }
  0x28   : > { %889 = vmatprep.subr.bf16.mxu1 %v1783_v1  ;;  %1490 = vmatpush3.bf16.msra.mxu0 %v1634_v21  ;;  %v1715_v13 = vld [vmem:[%s1929_s24 + $0x168] ss:$16 sps:$4 sm:$0xff]   ;;  %v1716_v14 = vld [vmem:[%s1929_s24 + $0x18c] ss:$16 sps:$4 sm:$0xff]  }
  0x29   : > { %1491 = vmatprep.subr.bf16.mxu0 %v1636_v23  ;;  %v1718_v15 = vld [vmem:[%s1929_s24 + $0x188] ss:$16 sps:$4 sm:$0xff]  }
  0x2b   : > { %890 = vmatpush1.bf16.msra.mxu1 %v1635_v22  ;;  %v2021_v22 = vld [vmem:[%s2121_s2] ss:$0 sm:$0xff] }
  0x2c   : > { %891 = vmatprep.subr.bf16.mxu1 %v1783_v1  ;;  %1492 = vmatpush3.bf16.msra.mxu0 %v1637_v25 }
  0x2f   : > { %892 = vmatpush1.bf16.msra.mxu1 %v1638_v26  ;;  %771 = vmatmul.mubr.bf16.vlgmr.msra.gmra.mrb[0].mxu0 %v1639_v28 }
  0x30   : > { %893 = vmatprep.subr.bf16.mxu1 %v1783_v1  ;;  %778 = vmatprep.mubr.bf16.mxu0 %v1644_v29 }
  0x33   : > { %894 = vmatpush1.bf16.msra.mxu1 %v1642_v30 }
  0x34   : > { %895 = vmatprep.subr.bf16.mxu1 %v1783_v1  ;;  %v1698_v1 = vld [vmem:[%s1929_s24 + $0x144] ss:$16 sps:$4 sm:$0xff]   ;;  %s1399_s24 = smul.u32 1664, %s1828_s16  ;;  %s1719_s16 = scalar_lea.vmem %s2073_s8, 1664 }
  0x35   : > { %p1720_p11 = scmp.ne.s32.totalorder %s2073_s8, %s1719_s16  ;;  %p1727_p1 = scmp.lt.s32.totalorder %s1725_s25, %s1719_s16 }
  0x36   : > { %s2071_s11 = scalar_lea.hbm %s2122_s3, %s1399_s24 }
  0x37   : > { %896 = vmatpush1.bf16.msra.mxu1 %v1643_v31  ;;  %779 = vmatmul.mubr.bf16.gmra.mrb[4].mxu0 %v1649_v32  ;;  %p1721_p12 = pnand %p1720_p11, %p1845_p5  ;;  %p1728_p2 = por %p1727_p1, %p1726_p0 }
  0x38   : > { %786 = vmatprep.mubr.bf16.mxu0 %v1650_v33 }
  0x39   : > { %p1722_p13 = pneg %p1721_p12 }
  0x3a   : > { %908 = vmatmul.mubr.bf16.vlgmr.msra.gmra.mrb[0].mxu1 %v1646_v34 }
  0x3b   : > { %1331 = vmatprep.mubr.msk.bf16.mxu1 %vm698_vm0, %v1652_v35  ;;  %p1729_p3 = pnand %p1728_p2, %p1722_p13 }
  0x3f   : > { %787 = vmatmul.mubr.bf16.gmra.mrb[8].mxu0 %v1654_v36 }
  0x40   : > { %794 = vmatprep.mubr.bf16.mxu0 %v1656_v37 }
  0x42   : > { %916 = vmatmul.mubr.bf16.gmra.mrb[4].mxu1 %v1655_v38 }
  0x43   : > { %1332 = vmatprep.mubr.msk.bf16.mxu1 %vm698_vm0, %v1658_v39 }
  0x47   : > { %795 = vmatmul.mubr.bf16.gmra.mrb[12].mxu0 %v1660_v40 }
  0x48   : > { %802 = vmatprep.mubr.bf16.mxu0 %v1662_v41 }
  0x4a   : > { %924 = vmatmul.mubr.bf16.gmra.mrb[8].mxu1 %v1661_v42 }
  0x4b   : > { %1333 = vmatprep.mubr.msk.bf16.mxu1 %vm698_vm0, %v1664_v43 }
  0x4f   : > { %803 = vmatmul.mubr.bf16.gmra.mrb[16].mxu0 %v1666_v44 }
  0x50   : > { %810 = vmatprep.mubr.bf16.mxu0 %v1668_v45 }
  0x52   : > { %932 = vmatmul.mubr.bf16.gmra.mrb[12].mxu1 %v1667_v46 }
  0x53   : > { %1334 = vmatprep.mubr.msk.bf16.mxu1 %vm698_vm0, %v1670_v47 }
  0x57   : > { %811 = vmatmul.mubr.bf16.gmra.mrb[20].mxu0 %v1672_v48 }
  0x58   : > { %818 = vmatprep.mubr.bf16.mxu0 %v1674_v49 }
  0x5a   : > { %940 = vmatmul.mubr.bf16.gmra.mrb[16].mxu1 %v1673_v50 }
  0x5b   : > { %1335 = vmatprep.mubr.msk.bf16.mxu1 %vm698_vm0, %v1676_v51 }
  0x5f   : > { %819 = vmatmul.mubr.bf16.gmra.mrb[24].mxu0 %v1678_v52 }
  0x60   : > { %826 = vmatprep.mubr.bf16.mxu0 %v1680_v53 }
  0x62   : > { %948 = vmatmul.mubr.bf16.gmra.mrb[20].mxu1 %v1679_v54 }
  0x63   : > { %1336 = vmatprep.mubr.msk.bf16.mxu1 %vm698_vm0, %v1682_v55 }
  0x67   : > { %827 = vmatmul.mubr.bf16.gmra.mrb[28].mxu0 %v1684_v56 }
  0x68   : > { %834 = vmatprep.mubr.bf16.mxu0 %v1686_v57 }
  0x6a   : > { %956 = vmatmul.mubr.bf16.gmra.mrb[24].mxu1 %v1685_v58 }
  0x6b   : > { %1337 = vmatprep.mubr.msk.bf16.mxu1 %vm698_vm0, %v1688_v59 }
  0x6f   : > { %835 = vmatmul.mubr.bf16.gmra.mrb[32].mxu0 %v1690_v60 }
  0x70   : > { %842 = vmatprep.mubr.bf16.mxu0 %v1692_v61 }
  0x72   : > { %964 = vmatmul.mubr.bf16.gmra.mrb[28].mxu1 %v1691_v62 }
  0x73   : > { %1338 = vmatprep.mubr.msk.bf16.mxu1 %vm698_vm0, %v1694_v63 }
  0x77   : > { %843 = vmatmul.mubr.bf16.gmra.mrb[36].mxu0 %v1696_v0 }
  0x78   : > { %850 = vmatprep.mubr.bf16.mxu0 %v1698_v1 }
  0x7a   : > { %972 = vmatmul.mubr.bf16.gmra.mrb[32].mxu1 %v1697_v2 }
  0x7b   : > { %1339 = vmatprep.mubr.msk.bf16.mxu1 %vm698_vm0, %v1700_v3 }
  0x7f   : > { %851 = vmatmul.mubr.bf16.gmra.mrb[40].mxu0 %v1702_v4 }
  0x80   : > { %858 = vmatprep.mubr.bf16.mxu0 %v1704_v5 }
  0x82   : > { %980 = vmatmul.mubr.bf16.gmra.mrb[36].mxu1 %v1703_v6 }
  0x83   : > { %1340 = vmatprep.mubr.msk.bf16.mxu1 %vm698_vm0, %v1706_v7 }
  0x87   : > { %859 = vmatmul.mubr.bf16.gmra.mrb[44].mxu0 %v1708_v8 }
  0x88   : > { %866 = vmatprep.mubr.bf16.mxu0 %v1710_v9 }
  0x8a   : > { %988 = vmatmul.mubr.bf16.gmra.mrb[40].mxu1 %v1709_v10 }
  0x8b   : > { %1341 = vmatprep.mubr.msk.bf16.mxu1 %vm698_vm0, %v1712_v11 }
  0x8f   : > { %867 = vmatmul.mubr.bf16.gmra.mrb[48].mxu0 %v1714_v12 }
  0x92   : > { %996 = vmatmul.mubr.bf16.gmra.mrb[44].mxu1 %v1715_v13 }
  0x93   : > { %1342 = vmatprep.mubr.msk.bf16.mxu1 %vm698_vm0, %v1716_v14 }
  0x9a   : > { %1004 = vmatmul.mubr.bf16.gmra.mrb[48].mxu1 %v1718_v15 }
 0x102   : > { %v1493_v16 = vpop.f32.mrb[0].mxu0 }
 0x103   : > { %v1494_v17 = vpop.f32.mrb[1].mxu0 }
 0x104   : > { %v1495_v18 = vadd.f32 %v1494_v17, %v1493_v16  ;;  %v1496_v19 = vpop.f32.mrb[2].mxu0 }
 0x105   : > { %v1497_v20 = vpop.f32.mrb[3].mxu0 }
 0x106   : > { %v1498_v21 = vadd.f32 %v1497_v20, %v1496_v19  ;;  %v773_v23 = vadd.f32 %v1495_v18, %v2021_v22 }
 0x108   : > { %v776_v31 = vadd.f32 %v1498_v21, %v2021_v22 }
 0x10a   : > { %v1499_v24 = vpop.f32.mrb[4].mxu0 }
 0x10b   : > { %v1500_v25 = vpop.f32.mrb[5].mxu0 }
 0x10c   : > { %v1501_v27 = vadd.f32 %v1500_v25, %v1499_v24  ;;  %v1502_v28 = vpop.f32.mrb[6].mxu0 }
 0x10d   : > { %v909_v26 = vpop.f32.mrb[0].mxu1  ;;  %v1503_v32 = vpop.f32.mrb[7].mxu0 }
 0x10e   : > { %v910_v29 = vadd.f32 %v909_v26, %v773_v23  ;;  %v911_v30 = vpop.f32.mrb[1].mxu1  ;;  %v1504_v34 = vadd.f32 %v1503_v32, %v1502_v28  ;;  %v781_v39 = vadd.f32 %v1501_v27, %v2021_v22 }
 0x10f   : > { %v912_v33 = vpop.f32.mrb[2].mxu1 }
 0x110   : > { %v913_v35 = vadd.f32 %v912_v33, %v776_v31  ;;  %v914_v36 = vpop.f32.mrb[3].mxu1  ;;  %v1012_v37 = vmax.f32 %v910_v29, 0.0  ;;  %v784_v48 = vadd.f32 %v1504_v34, %v2021_v22 }
 0x112   : > { %v1013_v38 = vmax.f32 %v913_v35, 0.0  ;;  %v1505_v40 = vpop.f32.mrb[8].mxu0 }
 0x113   : > { %v1506_v42 = vpop.f32.mrb[9].mxu0 }
 0x114   : > { %v1403_v41 = vpack.c.bf16 %v1013_v38, %v1012_v37  ;;  %v1507_v44 = vadd.f32 %v1506_v42, %v1505_v40  ;;  %v1508_v45 = vpop.f32.mrb[10].mxu0 }
 0x115   : > { %v917_v43 = vpop.f32.mrb[4].mxu1  ;;  %v1509_v49 = vpop.f32.mrb[11].mxu0 }
 0x116   : > { %1404 = vst [vmem:[%s2029_s7] sm:$0xff] %v1403_v41   ;;  %v918_v46 = vadd.f32 %v917_v43, %v781_v39  ;;  %v919_v47 = vpop.f32.mrb[5].mxu1  ;;  %v1510_v51 = vadd.f32 %v1509_v49, %v1508_v45  ;;  %v789_v56 = vadd.f32 %v1507_v44, %v2021_v22 }
 0x117   : > { %v920_v50 = vpop.f32.mrb[6].mxu1 }
 0x118   : > { %v921_v52 = vadd.f32 %v920_v50, %v784_v48  ;;  %v922_v53 = vpop.f32.mrb[7].mxu1  ;;  %v1014_v54 = vmax.f32 %v918_v46, 0.0  ;;  %v792_v1 = vadd.f32 %v1510_v51, %v2021_v22 }
 0x11a   : > { %v1015_v55 = vmax.f32 %v921_v52, 0.0  ;;  %v1511_v57 = vpop.f32.mrb[12].mxu0 }
 0x11b   : > { %v1512_v59 = vpop.f32.mrb[13].mxu0 }
 0x11c   : > { %v1408_v58 = vpack.c.bf16 %v1015_v55, %v1014_v54  ;;  %v1513_v61 = vadd.f32 %v1512_v59, %v1511_v57  ;;  %v1514_v62 = vpop.f32.mrb[14].mxu0 }
 0x11d   : > { %v925_v60 = vpop.f32.mrb[8].mxu1  ;;  %v1515_v2 = vpop.f32.mrb[15].mxu0 }
 0x11e   : > { %1465 = vst [vmem:[%s2029_s7 + $0x8] sm:$0xff] %v1408_v58   ;;  %v926_v63 = vadd.f32 %v925_v60, %v789_v56  ;;  %v927_v0 = vpop.f32.mrb[9].mxu1  ;;  %v1516_v4 = vadd.f32 %v1515_v2, %v1514_v62  ;;  %v797_v9 = vadd.f32 %v1513_v61, %v2021_v22 }
 0x11f   : > { %v928_v3 = vpop.f32.mrb[10].mxu1 }
 0x120   : > { %v929_v5 = vadd.f32 %v928_v3, %v792_v1  ;;  %v930_v6 = vpop.f32.mrb[11].mxu1  ;;  %v1016_v7 = vmax.f32 %v926_v63, 0.0  ;;  %v800_v18 = vadd.f32 %v1516_v4, %v2021_v22 }
 0x122   : > { %v1017_v8 = vmax.f32 %v929_v5, 0.0  ;;  %v1517_v10 = vpop.f32.mrb[16].mxu0 }
 0x123   : > { %v1518_v12 = vpop.f32.mrb[17].mxu0 }
 0x124   : > { %v1413_v11 = vpack.c.bf16 %v1017_v8, %v1016_v7  ;;  %v1519_v14 = vadd.f32 %v1518_v12, %v1517_v10  ;;  %v1520_v15 = vpop.f32.mrb[18].mxu0 }
 0x125   : > { %v933_v13 = vpop.f32.mrb[12].mxu1  ;;  %v1521_v19 = vpop.f32.mrb[19].mxu0 }
 0x126   : > { %1466 = vst [vmem:[%s2029_s7 + $0x10] sm:$0xff] %v1413_v11   ;;  %v934_v16 = vadd.f32 %v933_v13, %v797_v9  ;;  %v935_v17 = vpop.f32.mrb[13].mxu1  ;;  %v1522_v21 = vadd.f32 %v1521_v19, %v1520_v15  ;;  %v805_v27 = vadd.f32 %v1519_v14, %v2021_v22 }
 0x127   : > { %v936_v20 = vpop.f32.mrb[14].mxu1 }
 0x128   : > { %v937_v23 = vadd.f32 %v936_v20, %v800_v18  ;;  %v938_v24 = vpop.f32.mrb[15].mxu1  ;;  %v1018_v25 = vmax.f32 %v934_v16, 0.0  ;;  %v808_v36 = vadd.f32 %v1522_v21, %v2021_v22 }
 0x12a   : > { %v1019_v26 = vmax.f32 %v937_v23, 0.0  ;;  %v1523_v28 = vpop.f32.mrb[20].mxu0 }
 0x12b   : > { %v1524_v30 = vpop.f32.mrb[21].mxu0 }
 0x12c   : > { %v1418_v29 = vpack.c.bf16 %v1019_v26, %v1018_v25  ;;  %v1525_v32 = vadd.f32 %v1524_v30, %v1523_v28  ;;  %v1526_v33 = vpop.f32.mrb[22].mxu0 }
 0x12d   : > { %v941_v31 = vpop.f32.mrb[16].mxu1  ;;  %v1527_v37 = vpop.f32.mrb[23].mxu0 }
 0x12e   : > { %1467 = vst [vmem:[%s2029_s7 + $0x18] sm:$0xff] %v1418_v29   ;;  %v942_v34 = vadd.f32 %v941_v31, %v805_v27  ;;  %v943_v35 = vpop.f32.mrb[17].mxu1  ;;  %v1528_v39 = vadd.f32 %v1527_v37, %v1526_v33  ;;  %v813_v44 = vadd.f32 %v1525_v32, %v2021_v22 }
 0x12f   : > { %v944_v38 = vpop.f32.mrb[18].mxu1 }
 0x130   : > { %v945_v40 = vadd.f32 %v944_v38, %v808_v36  ;;  %v946_v41 = vpop.f32.mrb[19].mxu1  ;;  %v1020_v42 = vmax.f32 %v942_v34, 0.0  ;;  %v816_v53 = vadd.f32 %v1528_v39, %v2021_v22 }
 0x132   : > { %v1021_v43 = vmax.f32 %v945_v40, 0.0  ;;  %v1529_v45 = vpop.f32.mrb[24].mxu0 }
 0x133   : > { %v1530_v47 = vpop.f32.mrb[25].mxu0 }
 0x134   : > { %v1423_v46 = vpack.c.bf16 %v1021_v43, %v1020_v42  ;;  %v1531_v49 = vadd.f32 %v1530_v47, %v1529_v45  ;;  %v1532_v50 = vpop.f32.mrb[26].mxu0 }
 0x135   : > { %v949_v48 = vpop.f32.mrb[20].mxu1  ;;  %v1533_v54 = vpop.f32.mrb[27].mxu0 }
 0x136   : > { %1468 = vst [vmem:[%s2029_s7 + $0x20] sm:$0xff] %v1423_v46   ;;  %v950_v51 = vadd.f32 %v949_v48, %v813_v44  ;;  %v951_v52 = vpop.f32.mrb[21].mxu1  ;;  %v1534_v56 = vadd.f32 %v1533_v54, %v1532_v50  ;;  %v821_v61 = vadd.f32 %v1531_v49, %v2021_v22 }
 0x137   : > { %v952_v55 = vpop.f32.mrb[22].mxu1 }
 0x138   : > { %v953_v57 = vadd.f32 %v952_v55, %v816_v53  ;;  %v954_v58 = vpop.f32.mrb[23].mxu1  ;;  %v1022_v59 = vmax.f32 %v950_v51, 0.0  ;;  %v824_v6 = vadd.f32 %v1534_v56, %v2021_v22 }
 0x13a   : > { %v1023_v60 = vmax.f32 %v953_v57, 0.0  ;;  %v1535_v62 = vpop.f32.mrb[28].mxu0 }
 0x13b   : > { %v1536_v0 = vpop.f32.mrb[29].mxu0 }
 0x13c   : > { %v1428_v63 = vpack.c.bf16 %v1023_v60, %v1022_v59  ;;  %v1537_v2 = vadd.f32 %v1536_v0, %v1535_v62  ;;  %v1538_v3 = vpop.f32.mrb[30].mxu0 }
 0x13d   : > { %v957_v1 = vpop.f32.mrb[24].mxu1  ;;  %v1539_v7 = vpop.f32.mrb[31].mxu0 }
 0x13e   : > { %1469 = vst [vmem:[%s2029_s7 + $0x28] sm:$0xff] %v1428_v63   ;;  %v958_v4 = vadd.f32 %v957_v1, %v821_v61  ;;  %v959_v5 = vpop.f32.mrb[25].mxu1  ;;  %v1540_v9 = vadd.f32 %v1539_v7, %v1538_v3  ;;  %v829_v14 = vadd.f32 %v1537_v2, %v2021_v22 }
 0x13f   : > { %v960_v8 = vpop.f32.mrb[26].mxu1 }
 0x140   : > { %v961_v10 = vadd.f32 %v960_v8, %v824_v6  ;;  %v962_v11 = vpop.f32.mrb[27].mxu1  ;;  %v1024_v12 = vmax.f32 %v958_v4, 0.0  ;;  %v832_v24 = vadd.f32 %v1540_v9, %v2021_v22 }
 0x142   : > { %v1025_v13 = vmax.f32 %v961_v10, 0.0  ;;  %v1541_v15 = vpop.f32.mrb[32].mxu0 }
 0x143   : > { %v1542_v17 = vpop.f32.mrb[33].mxu0 }
 0x144   : > { %v1433_v16 = vpack.c.bf16 %v1025_v13, %v1024_v12  ;;  %v1543_v19 = vadd.f32 %v1542_v17, %v1541_v15  ;;  %v1544_v20 = vpop.f32.mrb[34].mxu0 }
 0x145   : > { %v965_v18 = vpop.f32.mrb[28].mxu1  ;;  %v1545_v25 = vpop.f32.mrb[35].mxu0 }
 0x146   : > { %1470 = vst [vmem:[%s2029_s7 + $0x30] sm:$0xff] %v1433_v16   ;;  %v966_v21 = vadd.f32 %v965_v18, %v829_v14  ;;  %v967_v23 = vpop.f32.mrb[29].mxu1  ;;  %v1546_v27 = vadd.f32 %v1545_v25, %v1544_v20  ;;  %v837_v32 = vadd.f32 %v1543_v19, %v2021_v22 }
 0x147   : > { %v968_v26 = vpop.f32.mrb[30].mxu1 }
 0x148   : > { %v969_v28 = vadd.f32 %v968_v26, %v832_v24  ;;  %v970_v29 = vpop.f32.mrb[31].mxu1  ;;  %v1026_v30 = vmax.f32 %v966_v21, 0.0  ;;  %v840_v41 = vadd.f32 %v1546_v27, %v2021_v22 }
 0x14a   : > { %v1027_v31 = vmax.f32 %v969_v28, 0.0  ;;  %v1547_v33 = vpop.f32.mrb[36].mxu0 }
 0x14b   : > { %v1548_v35 = vpop.f32.mrb[37].mxu0 }
 0x14c   : > { %v1438_v34 = vpack.c.bf16 %v1027_v31, %v1026_v30  ;;  %v1549_v37 = vadd.f32 %v1548_v35, %v1547_v33  ;;  %v1550_v38 = vpop.f32.mrb[38].mxu0 }
 0x14d   : > { %v973_v36 = vpop.f32.mrb[32].mxu1  ;;  %v1551_v42 = vpop.f32.mrb[39].mxu0 }
 0x14e   : > { %1471 = vst [vmem:[%s2029_s7 + $0x38] sm:$0xff] %v1438_v34   ;;  %v974_v39 = vadd.f32 %v973_v36, %v837_v32  ;;  %v975_v40 = vpop.f32.mrb[33].mxu1  ;;  %v1552_v44 = vadd.f32 %v1551_v42, %v1550_v38  ;;  %v845_v49 = vadd.f32 %v1549_v37, %v2021_v22 }
 0x14f   : > { %v976_v43 = vpop.f32.mrb[34].mxu1 }
 0x150   : > { %v977_v45 = vadd.f32 %v976_v43, %v840_v41  ;;  %v978_v46 = vpop.f32.mrb[35].mxu1  ;;  %v1028_v47 = vmax.f32 %v974_v39, 0.0  ;;  %v848_v58 = vadd.f32 %v1552_v44, %v2021_v22 }
 0x152   : > { %v1029_v48 = vmax.f32 %v977_v45, 0.0  ;;  %v1553_v50 = vpop.f32.mrb[40].mxu0 }
 0x153   : > { %v1554_v52 = vpop.f32.mrb[41].mxu0 }
 0x154   : > { %v1443_v51 = vpack.c.bf16 %v1029_v48, %v1028_v47  ;;  %v1555_v54 = vadd.f32 %v1554_v52, %v1553_v50  ;;  %v1556_v55 = vpop.f32.mrb[42].mxu0 }
 0x155   : > { %v981_v53 = vpop.f32.mrb[36].mxu1  ;;  %v1557_v59 = vpop.f32.mrb[43].mxu0 }
 0x156   : > { %1472 = vst [vmem:[%s2029_s7 + $0x40] sm:$0xff] %v1443_v51   ;;  %v982_v56 = vadd.f32 %v981_v53, %v845_v49  ;;  %v983_v57 = vpop.f32.mrb[37].mxu1  ;;  %v1558_v61 = vadd.f32 %v1557_v59, %v1556_v55  ;;  %v853_v2 = vadd.f32 %v1555_v54, %v2021_v22 }
 0x157   : > { %v984_v60 = vpop.f32.mrb[38].mxu1 }
 0x158   : > { %v985_v62 = vadd.f32 %v984_v60, %v848_v58  ;;  %v986_v63 = vpop.f32.mrb[39].mxu1  ;;  %v1030_v0 = vmax.f32 %v982_v56, 0.0  ;;  %v856_v11 = vadd.f32 %v1558_v61, %v2021_v22 }
 0x15a   : > { %v1031_v1 = vmax.f32 %v985_v62, 0.0  ;;  %v1559_v3 = vpop.f32.mrb[44].mxu0 }
 0x15b   : > { %v1560_v5 = vpop.f32.mrb[45].mxu0 }
 0x15c   : > { %v1448_v4 = vpack.c.bf16 %v1031_v1, %v1030_v0  ;;  %v1561_v7 = vadd.f32 %v1560_v5, %v1559_v3  ;;  %v1562_v8 = vpop.f32.mrb[46].mxu0 }
 0x15d   : > { %v989_v6 = vpop.f32.mrb[40].mxu1  ;;  %v1563_v12 = vpop.f32.mrb[47].mxu0 }
 0x15e   : > { %1473 = vst [vmem:[%s2029_s7 + $0x48] sm:$0xff] %v1448_v4   ;;  %v990_v9 = vadd.f32 %v989_v6, %v853_v2  ;;  %v991_v10 = vpop.f32.mrb[41].mxu1  ;;  %v1564_v14 = vadd.f32 %v1563_v12, %v1562_v8  ;;  %v861_v19 = vadd.f32 %v1561_v7, %v2021_v22 }
 0x15f   : > { %v992_v13 = vpop.f32.mrb[42].mxu1 }
 0x160   : > { %v993_v15 = vadd.f32 %v992_v13, %v856_v11  ;;  %v994_v16 = vpop.f32.mrb[43].mxu1  ;;  %v1032_v17 = vmax.f32 %v990_v9, 0.0  ;;  %v864_v29 = vadd.f32 %v1564_v14, %v2021_v22 }
 0x162   : > { %v1033_v18 = vmax.f32 %v993_v15, 0.0  ;;  %v1565_v20 = vpop.f32.mrb[48].mxu0 }
 0x163   : > { %v1566_v23 = vpop.f32.mrb[49].mxu0 }
 0x164   : > { %v1453_v21 = vpack.c.bf16 %v1033_v18, %v1032_v17  ;;  %v1567_v25 = vadd.f32 %v1566_v23, %v1565_v20  ;;  %v1568_v26 = vpop.f32.mrb[50].mxu0 }
 0x165   : > { %v997_v24 = vpop.f32.mrb[44].mxu1  ;;  %v1569_v30 = vpop.f32.mrb[51].mxu0 }
 0x166   : > { %1474 = vst [vmem:[%s2029_s7 + $0x50] sm:$0xff] %v1453_v21   ;;  %v998_v27 = vadd.f32 %v997_v24, %v861_v19  ;;  %v999_v28 = vpop.f32.mrb[45].mxu1  ;;  %v1570_v32 = vadd.f32 %v1569_v30, %v1568_v26  ;;  %v869_v37 = vadd.f32 %v1567_v25, %v2021_v22 }
 0x167   : > { %v1000_v31 = vpop.f32.mrb[46].mxu1 }
 0x168   : > { %v1001_v33 = vadd.f32 %v1000_v31, %v864_v29  ;;  %v1002_v34 = vpop.f32.mrb[47].mxu1  ;;  %v1034_v35 = vmax.f32 %v998_v27, 0.0  ;;  %v872_v42 = vadd.f32 %v1570_v32, %v2021_v22 }
 0x16a   : > { %v1035_v36 = vmax.f32 %v1001_v33, 0.0 }
 0x16c   : > { %v1458_v38 = vpack.c.bf16 %v1035_v36, %v1034_v35 }
 0x16d   : > { %v1005_v39 = vpop.f32.mrb[48].mxu1 }
 0x16e   : > { %1475 = vst [vmem:[%s2029_s7 + $0x58] sm:$0xff] %v1458_v38   ;;  %v1006_v40 = vadd.f32 %v1005_v39, %v869_v37  ;;  %v1007_v41 = vpop.f32.mrb[49].mxu1 }
 0x16f   : > { %v1008_v43 = vpop.f32.mrb[50].mxu1 }
 0x170   : > { %v1009_v44 = vadd.f32 %v1008_v43, %v872_v42  ;;  %v1010_v45 = vpop.f32.mrb[51].mxu1  ;;  %v1036_v46 = vmax.f32 %v1006_v40, 0.0 }
 0x172   : > { %v1037_v47 = vmax.f32 %v1009_v44, 0.0 }
 0x174   : > { %v1463_v48 = vpack.c.bf16 %v1037_v47, %v1036_v46 }
 0x176   : > { %1476 = vst [vmem:[%s2029_s7 + $0x60] sm:$0xff] %v1463_v48  }
 0x177   : > { %1732 = shalt.err (!%p1729_p3)
}
 0x178   : > { %s1733_s26 = scalar_lea.hbm %s2071_s11, 1664  ;;  %s1737_s29 = scalar_lea.hbm %s2122_s3, 3328 }
 0x179   : > { %p1734_p4 = scmp.ne.s32.totalorder %s2071_s11, %s1733_s26  ;;  %p1738_p9 = scmp.lt.u32.totalorder %s2071_s11, %s2122_s3 }
 0x17a   : > { %p1739_p10 = scmp.lt.u32.totalorder %s1737_s29, %s1733_s26  ;;  %p1741_p12 = scmp.lt.u32.totalorder %s1733_s26, %s2071_s11 }
 0x17b   : > { %p1735_p7 = pnand %p1734_p4, %p1845_p5 }
 0x17c   : > { %p1740_p11 = por %p1739_p10, %p1738_p9 }
 0x17d   : > { %p1736_p8 = pneg %p1735_p7 }
 0x17e   : > { %p1742_p13 = por %p1741_p12, %p1740_p11 }
 0x180   : > { %p1743_p0 = pnand %p1742_p13, %p1736_p8 }
 0x182   : > { %1746 = shalt.err (!%p1743_p0)
}
 0x183   : > { %s1785_s5 = smov 64   ;;  %s1786_s6 = smov 4  }
 0x184   : > { %1572 = dma.vmem_to_hbm [thread:$0]  (%p1845_p5), %s2073_s8, 1664, %s2071_s11, %s2078_s17, %s1785_s5, %s1785_s5, %s1786_s6  }
 0x185 PF: > { %p1578_p1 = scmp.ge.s32.totalorder %s1781_s15, 2  ;;  %s1197_s7 = sand.u32 1, %s1769_s12  }
 0x186   : > { %s1198_s24 = scalar_lea.sflag [#allocation3], %s1197_s7 }
 0x187   : > { %p1575_p2 = pnand %p1578_p1, %p1849_p6 }
 0x189   : > { %1764 = dma.done.wait (!%p1575_p2), %s1198_s24, 1664  }
 0x18a   : > { %1766 = vsyncadd (!%p1575_p2), %s1198_s24, 4294965632  ;;  %p13_p3 = scmp.ge.s32.totalorder %s1832_s18, 4   ;;  %s2125_s12 = smov %s1773_s13 }
 0x18b   : > { %s2126_s13 = smov %s1777_s14  ;;  %s2127_s14 = smov %s1843_s21 }
 0x18c   : > { %s2128_s15 = smov %s1832_s18  ;;  %15 = sbr.rel (!%p13_p3) target bundleno = 3 (0x3), region = 67 }
 0x193   :  { %1203 = vsyncpa [#allocation3], 1 }
 0x194   :  { %1205 = vsyncpa [#allocation3 + $0x1], 1 }

</bundles_post_ra>
